<compile_context>
chip_gen: v5e
topology: v5e:2x2
jax: 0.10.0
libtpu: 0.0.40
codegen_flags: <defaults>
</compile_context>

<pallas_src>
import functools

import jax
import jax.numpy as jnp
from jax.experimental import pallas as pl
from jax.experimental.pallas import tpu as pltpu


def _alex_dense_kernel(x_ref, w_ref, b_ref, *rest, training):
    if training:
        scale_ref, o_ref, acc_ref = rest
    else:
        o_ref, acc_ref = rest
        scale_ref = None

    k = pl.program_id(2)

    @pl.when(k == 0)
    def _init():
        acc_ref[...] = jnp.zeros_like(acc_ref)

    # MXU matmul on bf16 inputs, f32 accumulation.
    acc_ref[...] += jnp.dot(
        x_ref[...], w_ref[...], preferred_element_type=jnp.float32
    )

    @pl.when(k == pl.num_programs(2) - 1)
    def _finalize():
        y = acc_ref[...] + b_ref[...].astype(jnp.float32)   # bias
        y = jnp.maximum(y, 0.0)                              # ReLU
        if training:
            # scale_ref holds 0.0 (dropped) or 1/(1-p) (kept) -> one VPU mul.
            y = y * scale_ref[...]
        o_ref[...] = y.astype(o_ref.dtype)


def alex_dense(x, w, b, *, key=None, training=False, p=0.5,
               tm=None, tn=256, tk=256):
    """x: (B, Cin) f32, w: (Cin, Cout), b: (Cout,) -> (B, Cout) f32.

    Weight is stored as (in_features, out_features) (transpose of PyTorch's
    nn.Linear layout) so the kernel computes x @ W + b directly.
    """
    B, Cin = x.shape
    Cin_w, Cout = w.shape
    assert Cin == Cin_w and b.shape == (Cout,)

    # Tile sizes (demo-friendly; at real AlexDense sizes keep tn/tk multiples
    # of 256 and size against 32 MiB scoped VMEM so the same code fits v7x).
    tm = B if tm is None else min(tm, B)
    tn = min(tn, Cout)
    tk = min(tk, Cin)
    assert B % tm == 0 and Cout % tn == 0 and Cin % tk == 0

    # bf16 MXU inputs; bias / accumulator / epilogue in f32.
    x_bf = x.astype(jnp.bfloat16)
    w_bf = w.astype(jnp.bfloat16)
    b2 = b.reshape(1, Cout).astype(jnp.float32)

    inputs = [x_bf, w_bf, b2]
    in_specs = [
        pl.BlockSpec((tm, tk), lambda i, j, k: (i, k)),
        pl.BlockSpec((tk, tn), lambda i, j, k: (k, j)),
        pl.BlockSpec((1, tn), lambda i, j, k: (0, j)),
    ]

    if training:
        if key is None:
            key = jax.random.PRNGKey(0)
        keep = jax.random.bernoulli(key, 1.0 - p, (B, Cout))
        scale = keep.astype(jnp.float32) * (1.0 / (1.0 - p))
        inputs.append(scale)
        in_specs.append(pl.BlockSpec((tm, tn), lambda i, j, k: (i, j)))

    kernel = functools.partial(_alex_dense_kernel, training=training)
    grid = (B // tm, Cout // tn, Cin // tk)

    return pl.pallas_call(
        kernel,
        out_shape=jax.ShapeDtypeStruct((B, Cout), x.dtype),
        grid_spec=pltpu.PrefetchScalarGridSpec(
            num_scalar_prefetch=0,
            grid=grid,
            in_specs=in_specs,
            out_specs=pl.BlockSpec((tm, tn), lambda i, j, k: (i, j)),
            scratch_shapes=[pltpu.VMEM((tm, tn), jnp.float32)],
        ),
        compiler_params=pltpu.CompilerParams(
            dimension_semantics=("parallel", "parallel", "arbitrary"),
        ),
    )(*inputs)


if __name__ == "__main__":
    # Small shapes consistent with the module (dense layer on a flat feature
    # vector): batch=8, in=512, out=512 -> exercises a (1, 2, 2) tiled grid.
    B, Cin, Cout = 8, 512, 512

    key = jax.random.PRNGKey(0)
    kx, kw, kb, kd = jax.random.split(key, 4)

    x = jax.random.normal(kx, (B, Cin), dtype=jnp.float32)
    bound = 1.0 / (Cin ** 0.5)          # nn.Linear-style init bounds
    w = jax.random.uniform(kw, (Cin, Cout), dtype=jnp.float32,
                           minval=-bound, maxval=bound)
    b = jax.random.uniform(kb, (Cout,), dtype=jnp.float32,
                           minval=-bound, maxval=bound)

    # Reference computed with the same bf16-cast inputs the kernel uses.
    x_r = x.astype(jnp.bfloat16).astype(jnp.float32)
    w_r = w.astype(jnp.bfloat16).astype(jnp.float32)
    ref_relu = jnp.maximum(x_r @ w_r + b, 0.0)

    # Eval mode: dropout is identity.
    out_eval = jax.block_until_ready(alex_dense(x, w, b, training=False))
    assert out_eval.shape == (B, Cout)
    assert jnp.allclose(out_eval, ref_relu, atol=2e-2, rtol=2e-2), "eval mismatch"

    # Training mode: dropout p=0.5 with 1/(1-p) survivor scaling (mask is
    # deterministic given kd, so we can check it exactly).
    out_train = jax.block_until_ready(
        alex_dense(x, w, b, key=kd, training=True, p=0.5))
    keep = jax.random.bernoulli(kd, 0.5, (B, Cout)).astype(jnp.float32)
    ref_train = ref_relu * keep * 2.0
    assert out_train.shape == (B, Cout)
    assert jnp.allclose(out_train, ref_train, atol=2e-2, rtol=2e-2), "train mismatch"

    print("KERNEL_OK")
</pallas_src>

<mosaic_0001>
module attributes {stable_mosaic.version = 11 : i64} {
  func.func @_alex_dense_kernel(%arg0: i32, %arg1: i32, %arg2: i32, %arg3: memref<8x256xbf16, #tpu.memory_space<vmem>>, %arg4: memref<256x256xbf16, #tpu.memory_space<vmem>>, %arg5: memref<1x256xf32, #tpu.memory_space<vmem>>, %arg6: memref<8x256xf32, #tpu.memory_space<vmem>>, %arg7: memref<8x256xf32, #tpu.memory_space<vmem>>) attributes {dimension_semantics = [#tpu.dimension_semantics<parallel>, #tpu.dimension_semantics<parallel>, #tpu.dimension_semantics<arbitrary>], iteration_bounds = array<i64: 1, 2, 2>, scalar_prefetch = 0 : i64, scratch_operands = 1 : i64, tpu.core_type = #tpu.core_type<tc>, window_params = [{transform_indices = @transform_0, window_bounds = array<i64: 8, 256>}, {transform_indices = @transform_1, window_bounds = array<i64: 256, 256>}, {transform_indices = @transform_2, window_bounds = array<i64: 1, 256>}, {transform_indices = @transform_3, window_bounds = array<i64: 8, 256>}]} {
    %c0_i32 = arith.constant 0 : i32
    %0 = arith.cmpi eq, %arg2, %c0_i32 : i32
    %1 = arith.extui %0 : i1 to i32
    %c0_i32_0 = arith.constant 0 : i32
    %2 = arith.cmpi ne, %1, %c0_i32_0 : i32
    scf.if %2 {
      %cst_9 = arith.constant 0.000000e+00 : f32
      %12 = vector.broadcast %cst_9 : f32 to vector<8x256xf32>
      %c0_10 = arith.constant 0 : index
      %c0_11 = arith.constant 0 : index
      %13 = vector.load %arg7[%c0_10, %c0_11] : memref<8x256xf32, #tpu.memory_space<vmem>>, vector<8x256xf32>
      tpu.vector_store %arg7[%c0_10, %c0_11], %12 {strides = array<i32>} : memref<8x256xf32, #tpu.memory_space<vmem>>, vector<8x256xf32>,
    } else {
    }
    %c0 = arith.constant 0 : index
    %c0_1 = arith.constant 0 : index
    %3 = vector.load %arg7[%c0, %c0_1] : memref<8x256xf32, #tpu.memory_space<vmem>>, vector<8x256xf32>
    %c0_2 = arith.constant 0 : index
    %c0_3 = arith.constant 0 : index
    %4 = vector.load %arg3[%c0_2, %c0_3] : memref<8x256xbf16, #tpu.memory_space<vmem>>, vector<8x256xbf16>
    %c0_4 = arith.constant 0 : index
    %c0_5 = arith.constant 0 : index
    %5 = vector.load %arg4[%c0_4, %c0_5] : memref<256x256xbf16, #tpu.memory_space<vmem>>, vector<256x256xbf16>
    %cst = arith.constant dense<0.000000e+00> : vector<8x256xf32>
    %6 = tpu.matmul %4, %5, %cst {dimension_numbers = #tpu.dot_dimension_numbers<[1], [0], [0], [1], [0, 0, 1, 1], [], []>} : vector<8x256xbf16>, vector<256x256xbf16>, vector<8x256xf32> -> vector<8x256xf32>
    %7 = arith.addf %3, %6 : vector<8x256xf32>
    %c0_6 = arith.constant 0 : index
    %c0_7 = arith.constant 0 : index
    %8 = vector.load %arg7[%c0_6, %c0_7] : memref<8x256xf32, #tpu.memory_space<vmem>>, vector<8x256xf32>
    tpu.vector_store %arg7[%c0_6, %c0_7], %7 {strides = array<i32>} : memref<8x256xf32, #tpu.memory_space<vmem>>, vector<8x256xf32>,
    %c1_i32 = arith.constant 1 : i32
    %9 = arith.cmpi eq, %arg2, %c1_i32 : i32
    %10 = arith.extui %9 : i1 to i32
    %c0_i32_8 = arith.constant 0 : i32
    %11 = arith.cmpi ne, %10, %c0_i32_8 : i32
    scf.if %11 {
      %c0_9 = arith.constant 0 : index
      %c0_10 = arith.constant 0 : index
      %12 = vector.load %arg7[%c0_9, %c0_10] : memref<8x256xf32, #tpu.memory_space<vmem>>, vector<8x256xf32>
      %c0_11 = arith.constant 0 : index
      %c0_12 = arith.constant 0 : index
      %13 = vector.load %arg5[%c0_11, %c0_12] : memref<1x256xf32, #tpu.memory_space<vmem>>, vector<1x256xf32>
      %14 = vector.broadcast %13 : vector<1x256xf32> to vector<8x256xf32>
      %15 = arith.addf %12, %14 : vector<8x256xf32>
      %cst_13 = arith.constant 0.000000e+00 : f32
      %16 = vector.broadcast %cst_13 : f32 to vector<8x256xf32>
      %17 = arith.maximumf %15, %16 : vector<8x256xf32>
      %c0_14 = arith.constant 0 : index
      %c0_15 = arith.constant 0 : index
      %18 = vector.load %arg6[%c0_14, %c0_15] : memref<8x256xf32, #tpu.memory_space<vmem>>, vector<8x256xf32>
      tpu.vector_store %arg6[%c0_14, %c0_15], %17 {strides = array<i32>} : memref<8x256xf32, #tpu.memory_space<vmem>>, vector<8x256xf32>,
    } else {
    }
    return
  }
  func.func @transform_0(%arg0: i32, %arg1: i32, %arg2: i32) -> (i32, i32) {
    %c0_i32 = arith.constant 0 : i32
    return %arg0, %arg2 : i32, i32
  }
  func.func @transform_1(%arg0: i32, %arg1: i32, %arg2: i32) -> (i32, i32) {
    %c0_i32 = arith.constant 0 : i32
    return %arg2, %arg1 : i32, i32
  }
  func.func @transform_2(%arg0: i32, %arg1: i32, %arg2: i32) -> (i32, i32) {
    %c0_i32 = arith.constant 0 : i32
    %c0_i32_0 = arith.constant 0 : i32
    return %c0_i32, %arg1 : i32, i32
  }
  func.func @transform_3(%arg0: i32, %arg1: i32, %arg2: i32) -> (i32, i32) {
    %c0_i32 = arith.constant 0 : i32
    return %arg0, %arg1 : i32, i32
  }
}

</mosaic_0001>

<bundles_post_ra>
// kernel: tpu_custom_call.1
= control target key start
LH: loop header
LB: loop body
LE: loop exit
PB: predicated region body
PF: predicated region fallthrough
CT: control target
= control target key end

     0   :  { %s1708_s0 = inlined_call_operand.hbm [shape: bf16[8,512], index: 0, kind: input, shape index: {}]   ;;  %s1709_s1 = inlined_call_operand.hbm [shape: bf16[512,512], index: 1, kind: input, shape index: {}]   ;;  %s1710_s2 = inlined_call_operand.hbm [shape: f32[1,512], index: 2, kind: input, shape index: {}]   ;;  %s1711_s3 = inlined_call_operand.hbm [shape: f32[8,512], index: 3, kind: output, shape index: {}]  }
   0x1   :  { %1719 = sst [smem:[#allocation20_spill]] %s1708_s0 }
   0x2   :  { %1720 = sst [smem:[#allocation21_spill]] %s1709_s1 }
   0x3   :  { %1721 = sst [smem:[#allocation22_spill]] %s1711_s3 }
   0x4   :  { %8 = vsyncpa [#allocation4], 0 }
   0x5   :  { %10 = vsyncpa [#allocation4 + $0x1], 0 }
   0x6   :  { %11 = vsyncpa [#allocation7], 0 }
   0x7   :  { %13 = vsyncpa [#allocation7 + $0x1], 0 }
   0x8   :  { %14 = vsyncpa [#allocation5], 0 }
   0x9   :  { %16 = vsyncpa [#allocation5 + $0x1], 0  ;;  %s1338_s12 = smov 0   ;;  %s1340_s13 = smov 0  }
   0xa   :  { %s1342_s14 = smov 0   ;;  %s1344_s15 = smov 0  }
   0xb   :  { %s1346_s16 = smov 0   ;;  %s1348_s17 = smov 0  }
   0xc   :  { %s1350_s18 = smov 0   ;;  %s1352_s19 = smov 0  }
   0xd   :  { %s1354_s20 = smov 0   ;;  %s1356_s21 = smov 0  }
   0xe   :  { %s1358_s22 = smov 0   ;;  %s1360_s23 = smov 0  }
   0xf   :  { %s1362_s24 = smov 0   ;;  %s1364_s25 = smov 0  }
  0x10 LB: > { %1722 = sst [smem:[#allocation14_spill]] %s1292_s20  ;;  %s37_s26 = sadd.s32 1, %s1308_s24  ;;  %s1312_s25 = sphi %s1364_s25, %s22_s25   ;;  %s1308_s24 = sphi %s1362_s24, %s1747_s24   ;;  %s1304_s23 = sphi %s1360_s23, %s1746_s23   ;;  %s1300_s22 = sphi %s1358_s22, %s1745_s22   ;;  %s1296_s21 = sphi %s1356_s21, %s1744_s21   ;;  %s1292_s20 = sphi %s1354_s20, %s1743_s20   ;;  %s1288_s19 = sphi %s1352_s19, %s1755_s19   ;;  %s1284_s18 = sphi %s1350_s18, %s1754_s18   ;;  %s1280_s17 = sphi %s1348_s17, %s1753_s17   ;;  %s1276_s16 = sphi %s1346_s16, %s1752_s16   ;;  %s1272_s15 = sphi %s1344_s15, %s1751_s15   ;;  %s1268_s14 = sphi %s1342_s14, %s1750_s14   ;;  %s1264_s13 = sphi %s1340_s13, %s1749_s13   ;;  %s1260_s12 = sphi %s1338_s12, %s1748_s12  }
  0x11   : > { %1723 = sst [smem:[#allocation15_spill]] %s1304_s23  ;;  %p58_p0 = scmp.eq.s32.totalorder %s1312_s25, 0 }
  0x12   : > { %1724 = sst [smem:[#allocation16_spill]] %s1308_s24  ;;  %p85_p1 = scmp.ne.s32.totalorder %s1280_s17, %s1276_s16 }
  0x13   : > { %p91_p2 = scmp.ne.s32.totalorder %s1276_s16, %s1272_s15  ;;  %p950_p4 = scmp.lt.s32.totalorder %s1312_s25, 4 }
  0x14   : > { %p87_p3 = por %p85_p1, %p58_p0  ;;  %s191_s28 = sand.u32 1, %s1312_s25  }
  0x15   : > { %s193_s29 = sand.u32 1, %s1280_s17   ;;  %s1712_s4 = sshll.u32 %s1308_s24, 1 }
  0x16   : > { %s746_s30 = sshll.u32 %s193_s29, 8  ;;  %s894_s5 = sshll.u32 %s1304_s23, 7 }
  0x17   : > { %s195_s6 = scalar_lea.vmem [#allocation6], %s746_s30  ;;  %s201_s8 = sadd.s32 %s894_s5, %s1712_s4 }
  0x18   : > { %s206_s7 = sshll.u32 %s195_s6, 4  ;;  %s750_s9 = sshll.u32 %s201_s8, 2  ;;  %s207_s7 = int_to_ptr.vmem [resolvable:$true] %s206_s7 }
  0x19   : > { %p940_p5 = pnand %p950_p4, %p87_p3  ;;  %s1725_s1 = sld [smem:[#allocation21_spill]] }
  0x1a   : > { %p753_p6 = scmp.ge.s32.totalorder %s1312_s25, 1  ;;  %s1430_s30 = scalar_lea.sflag [#allocation7], %s191_s28 }
  0x1b   : > { %s1314_s5 = smov 256   ;;  %s1315_s6 = smov 128  }
  0x1c   : > { %s1316_s8 = smov 8   ;;  %p233_p7 = scmp.lt.s32.totalorder %s1312_s25, 5 }
  0x1d   : > { %s1439_s10 = sadd.s32 4294967295, %s1312_s25   ;;  %s34_s11 = sadd.s32 1, %s1304_s23 }
  0x1e   : > { %p1434_p8 = pnand %p753_p6, %p233_p7  ;;  %p35_p9 = scmp.ge.s32.totalorder %s34_s11, 2 }
  0x1f   : > { %s203_s29 = scalar_lea.hbm %s1725_s1, %s750_s9  ;;  %s50_s28 = sadd.s32 1, %s1292_s20 }
  0x20   : > { %s204_s27 = sshll.u32 %s203_s29, 4  ;;  %p57_p10 = scmp.ne.s32.totalorder %s1292_s20, %s1288_s19  ;;  %s205_s27 = int_to_ptr.hbm [resolvable:$true] %s204_s27 }
  0x21   : > { %942 = dma.hbm_to_vmem [thread:$0]  (!%p940_p5), %s205_s27, 4096, %s207_s7, %s1430_s30, %s1314_s5, %s1315_s6, %s1316_s8  }
  0x22   : > { %p63_p11 = scmp.ne.s32.totalorder %s1288_s19, %s1284_s18  ;;  %s1757_s11 = smov (%p35_p9, %s34_s11), 0 }
  0x23   : > { %1727 = sst [smem:[#allocation17_spill]] %s1757_s11  ;;  %s1759_s26 = smov (!%p35_p9, %s37_s26), %s1308_s24 }
  0x24   : > { %s46_s27 = ssub.s32 %s1304_s23, %s1757_s11  ;;  %p1456_p12 = por %p58_p0, %p57_p10 }
  0x25   : > { %p39_p13 = scmp.ge.s32.totalorder %s1759_s26, 2  ;;  %p48_p1 = scmp.eq.s32.totalorder %s46_s27, 0 }
  0x26   : > { %p64_p3 = scmp.eq.s32.totalorder %s1439_s10, 0  ;;  %s169_s29 = sand.u32 1, %s1292_s20  }
  0x27   : > { %s1761_s26 = smov (%p39_p13, %s1759_s26), 0  ;;  %s893_s1 = sshll.u32 %s1304_s23, 3 }
  0x28   : > { %1729 = sst [smem:[#allocation18_spill]] %s1761_s26  ;;  %p1469_p5 = por %p64_p3, %p63_p11 }
  0x29   : > { %s1465_s18 = scalar_select %p48_p1, %s1292_s20, %s50_s28  }
  0x2a   : > { %s74_s6 = ssub.s32 %s1308_s24, %s1761_s26  ;;  %p1480_p6 = por %p91_p2, %p64_p3 }
  0x2b   : > { %1730 = sst [smem:[#allocation19_spill]] %s1465_s18  ;;  %s75_s8 = sor.u32 %s74_s6, %s46_s27 }
  0x2c   : > { %p76_p7 = scmp.eq.s32.totalorder %s75_s8, 0  ;;  %s743_s28 = sshll.u32 %s169_s29, 3 }
  0x2d   : > { %s1733_s11 = sadd.s32 1, %s1280_s17  ;;  %s1734_s0 = sld [smem:[#allocation20_spill]] }
  0x2e   : > { %s1488_s18 = scalar_select %p76_p7, %s1280_s17, %s1733_s11  }
  0x2f   : > { %s173_s3 = scalar_lea.vmem [#allocation3], %s743_s28  ;;  %p937_p2 = pnand %p950_p4, %p1456_p12 }
  0x30   : > { %s184_s8 = sshll.u32 %s173_s3, 4  ;;  %s170_s23 = scalar_lea.sflag [#allocation4], %s169_s29  ;;  %s185_s8 = int_to_ptr.vmem [resolvable:$true] %s184_s8 }
  0x31   : > { %s740_s11 = sadd.s32 4294967294, %s1312_s25   ;;  %p102_p9 = scmp.eq.s32.totalorder %s74_s6, 0 }
  0x32   : > { %s104_s20 = sadd.s32 1, %s1268_s14  ;;  %p111_p10 = scmp.ne.s32.totalorder %s1268_s14, %s1264_s13 }
  0x33   : > { %s180_s15 = scalar_lea.hbm %s1734_s0, %s893_s1  ;;  %p117_p13 = scmp.ne.s32.totalorder %s1264_s13, %s1260_s12 }
  0x34   : > { %s182_s27 = sshll.u32 %s180_s15, 4  ;;  %p1506_p11 = por %p111_p10, %p58_p0  ;;  %s183_s27 = int_to_ptr.hbm [resolvable:$true] %s182_s27 }
  0x35   : > { %939 = dma.hbm_to_vmem [thread:$0]  (!%p937_p2), %s183_s27, 128, %s185_s8, %s170_s23  }
  0x36   : > { %s1502_s26 = scalar_select %p102_p9, %s1268_s14, %s104_s20  }
  0x37   : > { %p143_p1 = scmp.eq.s32.totalorder %s1439_s10, 3  ;;  %p149_p12 = scmp.eq.s32.totalorder %s740_s11, 3 }
  0x38   : > { %p1515_p7 = por %p117_p13, %p64_p3  ;;  %s218_s23 = sand.u32 1, %s1268_s14  }
  0x39   : > { %p1520_p2 = por %p143_p1, %p111_p10  ;;  %p1524_p9 = por %p149_p12, %p117_p13 }
  0x3a   : > { %s751_s6 = sshll.u32 %s218_s23, 1  ;;  %s1739_s28 = sshll.u32 %s1308_s24, 1 }
  0x3b   : > { %s224_s8 = scalar_lea.hbm %s1710_s2, %s1739_s28  ;;  %s220_s20 = scalar_lea.vmem [#allocation8], %s751_s6 }
  0x3c   : > { %s226_s11 = sshll.u32 %s224_s8, 4  ;;  %s228_s0 = sshll.u32 %s220_s20, 4  ;;  %s227_s11 = int_to_ptr.hbm [resolvable:$true] %s226_s11  ;;  %s229_s0 = int_to_ptr.vmem [resolvable:$true] %s228_s0 }
  0x3d   : > { %p943_p0 = pnand %p950_p4, %p1506_p11  ;;  %237 = sbr.rel (%p1434_p8) target bundleno = 291 (0x123), region = 32 }
  0x3e   : > { %s239_s23 = sand.u32 (!%p1434_p8), 1, %s1288_s19  }
  0x3f   : > { %945 = dma.hbm_to_vmem [thread:$0]  (!%p943_p0), %s227_s11, 32, %s229_s0, %s1430_s30  }
  0x40   : > { %s1541_s24 = sshll.u32 (!%p1434_p8), %s239_s23, 3  ;;  %s240_s15 = scalar_lea.sflag (!%p1434_p8), [#allocation4], %s239_s23 }
  0x41   : > { %s243_s28 = scalar_lea.vmem (!%p1434_p8), [#allocation3], %s1541_s24 }
  0x42   : > { %1243 = dma.done.wait (%p1469_p5), %s240_s15, 128  }
  0x43   : > { %1245 = vsyncadd (%p1469_p5), %s240_s15, 4294967168  ;;  %s249_s0 = sand.u32 1, %s1439_s10   ;;  %s251_s30 = sand.u32 1, %s1276_s16  }
  0x44   : > { %s755_s9 = sshll.u32 %s251_s30, 8  ;;  %s250_s1 = scalar_lea.sflag [#allocation7], %s249_s0 }
  0x45   : > { %s1550_s6 = scalar_lea.vmem [#allocation6], %s755_s9 }
  0x46   : > { %1247 = dma.done.wait (%p1480_p6), %s250_s1, 4096  }
  0x47   : > { %1249 = vsyncadd (%p1480_p6), %s250_s1, 4294963200  ;;  %s1557_s27 = sand.u32 1, %s1264_s13  }
  0x48   : > { %s756_s5 = sshll.u32 %s1557_s27, 1 }
  0x49   : > { %s1560_s8 = scalar_lea.vmem [#allocation8], %s756_s5 }
  0x4a   : > { %1251 = dma.done.wait (%p1515_p7), %s250_s1, 32  }
  0x4b   : > { %1253 = vsyncadd (%p1515_p7), %s250_s1, 4294967264  ;;  %s757_s10 = sshll.u32 %s1557_s27, 4  ;;  %p758_p4 = scmp.ne.s32.totalorder %s1296_s21, 0 }
  0x4c   : > { %s1567_s11 = scalar_lea.vmem [#allocation9], %s757_s10 }
  0x4d   : > { %305 = sbr.rel (%p758_p4) target bundleno = 85 (0x55), region = 48 }
  0x52   : > { %v1317_v0 = vmov 0.0  }
  0x53   : > { %306 = vst [vmem:[#allocation2] sm:$0xff] %v1317_v0 }
  0x54   : > { %307 = vst [vmem:[#allocation2 + $0x8] sm:$0xff] %v1317_v0 }
  0x55 PF: > { %v817_v1 = vld [vmem:[%s1550_s6 + $0x70] sm:$0xf]  ;;  %v910_v2 = vld [vmem:[%s1550_s6 + $0x74] sm:$0xf0]  ;;  %v909_v6 = vld [vmem:[%s1550_s6 + $0x74] sm:$0xf] }
  0x56   : > { %v881_v3 = vld [vmem:[%s1550_s6 + $0xf0] sm:$0xf]  ;;  %v818_v4 = vor.u32 %v910_v2, %v817_v1  ;;  %v926_v5 = vld [vmem:[%s1550_s6 + $0xf4] sm:$0xf0]  ;;  %v819_v7 = vld [vmem:[%s1550_s6 + $0x78] sm:$0xf0] }
  0x57   : > { %v882_v8 = vor.u32 %v926_v5, %v881_v3  ;;  %v822_v9 = vor.u32 %v909_v6, %v819_v7  ;;  %v925_v10 = vld [vmem:[%s1550_s6 + $0xf4] sm:$0xf]  ;;  %v883_v11 = vld [vmem:[%s1550_s6 + $0xf8] sm:$0xf0]  ;;  %v809_v12 = vld [vmem:[%s1550_s6 + $0x60] sm:$0xf] }
  0x58   : > { %510 = vmatpush.bf16.msra.mxu0 %v818_v4  ;;  %v886_v13 = vor.u32 %v925_v10, %v883_v11  ;;  %v908_v14 = vld [vmem:[%s1550_s6 + $0x64] sm:$0xf0]  ;;  %v873_v15 = vld [vmem:[%s1550_s6 + $0xe0] sm:$0xf]  ;;  %v907_v19 = vld [vmem:[%s1550_s6 + $0x64] sm:$0xf] }
  0x59   : > { %v924_v16 = vld [vmem:[%s1550_s6 + $0xe4] sm:$0xf0]  ;;  %523 = vmatpush.bf16.msra.mxu1 %v882_v8  ;;  %536 = vmatpush.bf16.msra.mxu2 %v822_v9  ;;  %v810_v17 = vor.u32 %v908_v14, %v809_v12  ;;  %v811_v20 = vld [vmem:[%s1550_s6 + $0x68] sm:$0xf0]  ;;  %v923_v21 = vld [vmem:[%s1550_s6 + $0xe4] sm:$0xf] }
  0x5a   : > { %v874_v18 = vor.u32 %v924_v16, %v873_v15  ;;  %549 = vmatpush.bf16.msra.mxu3 %v886_v13  ;;  %v814_v22 = vor.u32 %v907_v19, %v811_v20  ;;  %v875_v23 = vld [vmem:[%s1550_s6 + $0xe8] sm:$0xf0]  ;;  %v801_v24 = vld [vmem:[%s1550_s6 + $0x50] sm:$0xf]  ;;  %v906_v25 = vld [vmem:[%s1550_s6 + $0x54] sm:$0xf0] }
  0x5b   : > { %v878_v26 = vor.u32 %v923_v21, %v875_v23  ;;  %v865_v27 = vld [vmem:[%s1550_s6 + $0xd0] sm:$0xf]  ;;  %v922_v28 = vld [vmem:[%s1550_s6 + $0xd4] sm:$0xf0]  ;;  %v905_v29 = vld [vmem:[%s1550_s6 + $0x54] sm:$0xf]  ;;  %v802_v30 = vor.u32 %v906_v25, %v801_v24 }
  0x5c   : > { %511 = vmatpush.bf16.msra.mxu0 %v810_v17  ;;  %v803_v31 = vld [vmem:[%s1550_s6 + $0x58] sm:$0xf0]  ;;  %v921_v32 = vld [vmem:[%s1550_s6 + $0xd4] sm:$0xf]  ;;  %v866_v34 = vor.u32 %v922_v28, %v865_v27  ;;  %v793_v36 = vld [vmem:[%s1550_s6 + $0x40] sm:$0xf] }
  0x5d   : > { %v867_v33 = vld [vmem:[%s1550_s6 + $0xd8] sm:$0xf0]  ;;  %524 = vmatpush.bf16.msra.mxu1 %v874_v18  ;;  %537 = vmatpush.bf16.msra.mxu2 %v814_v22  ;;  %v806_v35 = vor.u32 %v905_v29, %v803_v31  ;;  %v904_v37 = vld [vmem:[%s1550_s6 + $0x44] sm:$0xf0]  ;;  %v857_v38 = vld [vmem:[%s1550_s6 + $0xc0] sm:$0xf] }
  0x5e   : > { %550 = vmatpush.bf16.msra.mxu3 %v878_v26  ;;  %v870_v39 = vor.u32 %v921_v32, %v867_v33  ;;  %v920_v40 = vld [vmem:[%s1550_s6 + $0xc4] sm:$0xf0]  ;;  %v903_v41 = vld [vmem:[%s1550_s6 + $0x44] sm:$0xf]  ;;  %v795_v42 = vld [vmem:[%s1550_s6 + $0x48] sm:$0xf0]  ;;  %v794_v45 = vor.u32 %v904_v37, %v793_v36 }
  0x5f   : > { %v919_v43 = vld [vmem:[%s1550_s6 + $0xc4] sm:$0xf]  ;;  %v859_v44 = vld [vmem:[%s1550_s6 + $0xc8] sm:$0xf0]  ;;  %v858_v46 = vor.u32 %v920_v40, %v857_v38  ;;  %v798_v47 = vor.u32 %v903_v41, %v795_v42  ;;  %v785_v48 = vld [vmem:[%s1550_s6 + $0x30] sm:$0xf] }
  0x60   : > { %512 = vmatpush.bf16.msra.mxu0 %v802_v30  ;;  %v902_v49 = vld [vmem:[%s1550_s6 + $0x34] sm:$0xf0]  ;;  %v849_v50 = vld [vmem:[%s1550_s6 + $0xb0] sm:$0xf]  ;;  %v862_v51 = vor.u32 %v919_v43, %v859_v44  ;;  %v901_v53 = vld [vmem:[%s1550_s6 + $0x34] sm:$0xf] }
  0x61   : > { %525 = vmatpush.bf16.msra.mxu1 %v866_v34  ;;  %538 = vmatpush.bf16.msra.mxu2 %v806_v35  ;;  %v918_v52 = vld [vmem:[%s1550_s6 + $0xb4] sm:$0xf0]  ;;  %v787_v54 = vld [vmem:[%s1550_s6 + $0x38] sm:$0xf0]  ;;  %v917_v55 = vld [vmem:[%s1550_s6 + $0xb4] sm:$0xf]  ;;  %v786_v57 = vor.u32 %v902_v49, %v785_v48 }
  0x62   : > { %551 = vmatpush.bf16.msra.mxu3 %v870_v39  ;;  %v851_v56 = vld [vmem:[%s1550_s6 + $0xb8] sm:$0xf0]  ;;  %v850_v58 = vor.u32 %v918_v52, %v849_v50  ;;  %v790_v59 = vor.u32 %v901_v53, %v787_v54  ;;  %v777_v60 = vld [vmem:[%s1550_s6 + $0x20] sm:$0xf]  ;;  %v900_v61 = vld [vmem:[%s1550_s6 + $0x24] sm:$0xf0] }
  0x63   : > { %v841_v62 = vld [vmem:[%s1550_s6 + $0xa0] sm:$0xf]  ;;  %v854_v63 = vor.u32 %v917_v55, %v851_v56  ;;  %v916_v0 = vld [vmem:[%s1550_s6 + $0xa4] sm:$0xf0]  ;;  %v899_v1 = vld [vmem:[%s1550_s6 + $0x24] sm:$0xf]  ;;  %v778_v5 = vor.u32 %v900_v61, %v777_v60 }
  0x64   : > { %513 = vmatpush.bf16.msra.mxu0 %v794_v45  ;;  %v779_v2 = vld [vmem:[%s1550_s6 + $0x28] sm:$0xf0]  ;;  %v915_v3 = vld [vmem:[%s1550_s6 + $0xa4] sm:$0xf]  ;;  %v842_v6 = vor.u32 %v916_v0, %v841_v62  ;;  %v769_v8 = vld [vmem:[%s1550_s6 + $0x10] sm:$0xf] }
  0x65   : > { %526 = vmatpush.bf16.msra.mxu1 %v858_v46  ;;  %539 = vmatpush.bf16.msra.mxu2 %v798_v47  ;;  %v843_v4 = vld [vmem:[%s1550_s6 + $0xa8] sm:$0xf0]  ;;  %v782_v7 = vor.u32 %v899_v1, %v779_v2  ;;  %v898_v9 = vld [vmem:[%s1550_s6 + $0x14] sm:$0xf0]  ;;  %v833_v10 = vld [vmem:[%s1550_s6 + $0x90] sm:$0xf] }
  0x66   : > { %552 = vmatpush.bf16.msra.mxu3 %v862_v51  ;;  %v846_v11 = vor.u32 %v915_v3, %v843_v4  ;;  %v914_v12 = vld [vmem:[%s1550_s6 + $0x94] sm:$0xf0]  ;;  %v897_v13 = vld [vmem:[%s1550_s6 + $0x14] sm:$0xf]  ;;  %v771_v14 = vld [vmem:[%s1550_s6 + $0x18] sm:$0xf0]  ;;  %v770_v17 = vor.u32 %v898_v9, %v769_v8 }
  0x67   : > { %v913_v15 = vld [vmem:[%s1550_s6 + $0x94] sm:$0xf]  ;;  %v835_v16 = vld [vmem:[%s1550_s6 + $0x98] sm:$0xf0]  ;;  %v834_v19 = vor.u32 %v914_v12, %v833_v10  ;;  %v774_v20 = vor.u32 %v897_v13, %v771_v14  ;;  %v761_v21 = vld [vmem:[%s1550_s6] sm:$0xf] }
  0x68   : > { %514 = vmatpush.bf16.msra.mxu0 %v786_v57  ;;  %v310_v18 = vld [vmem:[%s243_s28] sm:$0xff]  ;;  %v896_v22 = vld [vmem:[%s1550_s6 + $0x4] sm:$0xf0]  ;;  %v825_v23 = vld [vmem:[%s1550_s6 + $0x80] sm:$0xf]  ;;  %v838_v24 = vor.u32 %v913_v15, %v835_v16  ;;  %p887_p8 = scmp.ne.s32.totalorder %s1296_s21, 1 }
  0x69   : > { %527 = vmatpush.bf16.msra.mxu1 %v850_v58  ;;  %540 = vmatpush.bf16.msra.mxu2 %v790_v59  ;;  %v912_v25 = vld [vmem:[%s1550_s6 + $0x84] sm:$0xf0]  ;;  %v895_v26 = vld [vmem:[%s1550_s6 + $0x4] sm:$0xf]  ;;  %v763_v27 = vld [vmem:[%s1550_s6 + $0x8] sm:$0xf0]  ;;  %v344_v30 = vunpack.c.l.b16 %v310_v18  ;;  %v762_v31 = vor.u32 %v896_v22, %v761_v21  ;;  %v345_v32 = vunpack.c.h.b16 %v310_v18 }
  0x6a   : > { %553 = vmatpush.bf16.msra.mxu3 %v854_v63  ;;  %v911_v28 = vld [vmem:[%s1550_s6 + $0x84] sm:$0xf]  ;;  %v827_v29 = vld [vmem:[%s1550_s6 + $0x88] sm:$0xf0]  ;;  %v826_v33 = vor.u32 %v912_v25, %v825_v23  ;;  %v766_v34 = vor.u32 %v895_v26, %v763_v27 }
  0x6b   : > { %v830_v35 = vor.u32 %v911_v28, %v827_v29  ;;  %v346_v36 = vpack.c.b16 %v344_v30, %v344_v30  ;;  %v347_v37 = vpack.c.b16 %v345_v32, %v345_v32  ;;  %v308_v39 = vld [vmem:[#allocation2] sm:$0xff]  ;;  %v309_v44 = vld [vmem:[#allocation2 + $0x8] sm:$0xff] }
  0x6c   : > { %515 = vmatpush.bf16.msra.mxu0 %v778_v5 }
  0x6d   : > { %528 = vmatpush.bf16.msra.mxu1 %v842_v6  ;;  %541 = vmatpush.bf16.msra.mxu2 %v782_v7 }
  0x6e   : > { %554 = vmatpush.bf16.msra.mxu3 %v846_v11 }
  0x70   : > { %516 = vmatpush.bf16.msra.mxu0 %v770_v17 }
  0x71   : > { %529 = vmatpush.bf16.msra.mxu1 %v834_v19  ;;  %542 = vmatpush.bf16.msra.mxu2 %v774_v20 }
  0x72   : > { %555 = vmatpush.bf16.msra.mxu3 %v838_v24 }
  0x74   : > { %517 = vmatpush.bf16.msra.mxu0 %v762_v31 }
  0x75   : > { %530 = vmatpush.bf16.msra.mxu1 %v826_v33  ;;  %543 = vmatpush.bf16.msra.mxu2 %v766_v34 }
  0x76   : > { %556 = vmatpush.bf16.msra.mxu3 %v830_v35 }
  0x77   : > { %518 = vmatmul.bf16.vlgmr.msra.gmra.mxu0 %v346_v36 }
  0x78   : > { %531 = vmatmul.bf16.vlgmr.msra.gmra.mxu1 %v347_v37  ;;  %544 = vmatmul.bf16.vlgmr.msra.gmra.mxu2 %v346_v36 }
  0x79   : > { %557 = vmatmul.bf16.vlgmr.msra.gmra.mxu3 %v347_v37 }
  0xf4   : > { %v519_v38 = vpop.f32.mrf.mxu0 }
  0xf5   : > { %v532_v40 = vpop.f32.mrf.mxu1 }
  0xf6   : > { %v533_v41 = vadd.f32 %v532_v40, %v519_v38 }
  0xf8   : > { %v562_v42 = vadd.f32 %v533_v41, %v308_v39 }
  0xfa   : > { %564 = vst [vmem:[#allocation2] sm:$0xff] %v562_v42 }
  0xfb   : > { %v545_v43 = vpop.f32.mrf.mxu2 }
  0xfc   : > { %v558_v45 = vpop.f32.mrf.mxu3  ;;  %v521_v46 = vpop.f32.mrf.mxu0 }
  0xfd   : > { %v559_v47 = vadd.f32 %v558_v45, %v545_v43  ;;  %v534_v48 = vpop.f32.mrf.mxu1 }
  0xff   : > { %v563_v49 = vadd.f32 %v559_v47, %v309_v44 }
 0x100   : > { %569 = sbr.rel (%p887_p8) target bundleno = 271 (0x10f), region = 52 }
 0x101   : > { %565 = vst [vmem:[#allocation2 + $0x8] sm:$0xff] %v563_v49 }
 0x103   : > { %v547_v50 = vpop.f32.mrf.mxu2 }
 0x104   : > { %v560_v51 = vpop.f32.mrf.mxu3 }
 0x105   : > { %v570_v52 = vld [vmem:[#allocation2] sm:$0xff] }
 0x106   : > { %v572_v53 = vld [vmem:[%s1560_s8] sm:$0x3] }
 0x107   : > { %v574_v55 = vperm.slane %v572_v53, 0  ;;  %v575_v56 = vperm.slane %v572_v53, 1 }
 0x108   : > { %v571_v54 = vld [vmem:[#allocation2 + $0x8] sm:$0xff] }
 0x109   : > { %v578_v57 = vadd.f32 %v574_v55, %v570_v52  ;;  %v579_v58 = vadd.f32 %v575_v56, %v571_v54 }
 0x10b   : > { %v580_v59 = vmax.f32 %v578_v57, 0.0  ;;  %v581_v60 = vmax.f32 %v579_v58, 0.0 }
 0x10d   : > { %582 = vst [vmem:[%s1567_s11] sm:$0xff] %v580_v59 }
 0x10e   : > { %583 = vst [vmem:[%s1567_s11 + $0x8] sm:$0xff] %v581_v60 }
 0x10f PF: > { %s927_s21 = sshll.u32 %s1300_s22, 4  ;;  %s1740_s3 = sld [smem:[#allocation22_spill]] }
 0x110   : > { %s600_s23 = sshll.u32 %s1567_s11, 4  ;;  %s585_s28 = scalar_lea.sflag [#allocation5], %s1557_s27  ;;  %s601_s23 = int_to_ptr.vmem [resolvable:$true] %s600_s23 }
 0x115   : > { %s598_s20 = scalar_lea.hbm %s1740_s3, %s927_s21  ;;  %s1178_s22 = scalar_lea.hbm %s1740_s3, 32 }
 0x116   : > { %s602_s15 = sshll.u32 %s598_s20, 4  ;;  %s603_s15 = int_to_ptr.hbm [resolvable:$true] %s602_s15 }
 0x117   : > { %s1172_s0 = sshra.s32 %s603_s15, 4  ;;  %s1173_s0 = int_to_ptr.hbm [resolvable:$true] %s1172_s0 }
 0x118   : > { %s1174_s30 = scalar_lea.hbm %s1173_s0, 16  ;;  %p1179_p10 = scmp.lt.s32.totalorder %s1173_s0, %s1740_s3 }
 0x119   : > { %p1175_p3 = scmp.ne.s32.totalorder %s1173_s0, %s1174_s30  ;;  %p1180_p11 = scmp.lt.s32.totalorder %s1178_s22, %s1174_s30 }
 0x11b   : > { %p1176_p5 = pnand %p1175_p3, %p1520_p2  ;;  %p1181_p13 = por %p1180_p11, %p1179_p10 }
 0x11d   : > { %p1177_p6 = pneg %p1176_p5 }
 0x11f   : > { %p1182_p1 = pnand %p1181_p13, %p1177_p6 }
 0x121   : > { %1185 = shalt.err (!%p1182_p1)
}
 0x122   : > { %934 = dma.vmem_to_hbm [thread:$0]  (%p1520_p2), %s601_s23, 256, %s603_s15, %s585_s28  }
 0x123 PF: > { %p951_p12 = scmp.ge.s32.totalorder %s1312_s25, 2  ;;  %s614_s27 = sand.u32 1, %s1260_s12  }
 0x124   : > { %s615_s8 = scalar_lea.sflag [#allocation5], %s614_s27 }
 0x125   : > { %p947_p7 = pnand %p951_p12, %p1524_p9 }
 0x127   : > { %p948_p0 = pneg %p947_p7 }
 0x129   : > { %1255 = dma.done.wait (%p948_p0), %s615_s8, 256  }
 0x12a   : > { %1257 = vsyncadd (%p948_p0), %s615_s8, 4294967040  ;;  %s22_s25 = sadd.s32 1, %s1312_s25   ;;  %s1742_s7 = sld [smem:[#allocation14_spill]] }
 0x12b   : > { %p1661_p4 = scmp.ge.s32.totalorder %s22_s25, 6   ;;  %s1743_s20 = sld [smem:[#allocation19_spill]] }
 0x12c   : > { %s1744_s21 = sld [smem:[#allocation15_spill]]  ;;  %s1748_s12 = smov %s1264_s13 }
 0x12d   : > { %s1745_s22 = sld [smem:[#allocation16_spill]]  ;;  %s1749_s13 = smov %s1268_s14 }
 0x12e   : > { %s1746_s23 = sld [smem:[#allocation17_spill]]  ;;  %s1750_s14 = smov %s1502_s26 }
 0x12f   : > { %s1747_s24 = sld [smem:[#allocation18_spill]]  ;;  %s1751_s15 = smov %s1276_s16 }
 0x130   : > { %s1752_s16 = smov %s1280_s17  ;;  %s1753_s17 = smov %s1488_s18 }
 0x131   : > { %s1754_s18 = smov %s1288_s19  ;;  %s1755_s19 = smov %s1742_s7 }
 0x132   :  { %21 = sbr.rel (!%p1661_p4) target bundleno = 16 (0x10), region = 109 }
 0x137   :  { %621 = vsyncpa [#allocation4], 1 }
 0x138   :  { %623 = vsyncpa [#allocation4 + $0x1], 1 }
 0x139   :  { %624 = vsyncpa [#allocation7], 1 }
 0x13a   :  { %626 = vsyncpa [#allocation7 + $0x1], 1 }
 0x13b   :  { %627 = vsyncpa [#allocation5], 1 }
 0x13c   :  { %629 = vsyncpa [#allocation5 + $0x1], 1 }

</bundles_post_ra>
